<compile_context>
chip_gen: v5e
topology: v5e:2x2
jax: 0.10.0
libtpu: 0.0.40
codegen_flags: <defaults>
</compile_context>

<pallas_src>
import functools

import jax
import jax.numpy as jnp
from jax.experimental import pallas as pl
from jax.experimental.pallas import tpu as pltpu


def _round_up(x, m):
    return (x + m - 1) // m * m


@functools.lru_cache(maxsize=1)
def _num_tensorcores():
    """TensorCores per chip: 2 on v4 / v5p / v7x style chips, 1 on v5e / v6e."""
    try:
        kind = jax.devices()[0].device_kind.lower()
    except Exception:
        return 1
    if ("v4" in kind) or ("v5p" in kind) or ("v7" in kind) or ("7x" in kind):
        return 2
    return 1


# ----------------------------------------------------------------------------
# Fused matmul kernels:  out = relu( (A @ B) * scale + bias [+ residual] )
# A: [M, K] bf16   B: [K, N] bf16   scale/bias: [2, N] f32   residual: [M, N] bf16
# ----------------------------------------------------------------------------
def _mm_epilogue(y, sb_ref, r_ref, relu, out_dtype):
    y = y * sb_ref[0:1, :] + sb_ref[1:2, :]
    if r_ref is not None:
        y = y + r_ref[...].astype(jnp.float32)
    if relu:
        y = jnp.maximum(y, 0.0)
    return y.astype(out_dtype)


def _fused_mm_kernel_1step(*refs, relu, has_residual):
    """Single K-step: no f32 scratch, epilogue fused directly onto the MXU result."""
    if has_residual:
        a_ref, b_ref, sb_ref, r_ref, o_ref = refs
    else:
        a_ref, b_ref, sb_ref, o_ref = refs
        r_ref = None
    y = jnp.dot(a_ref[...], b_ref[...], preferred_element_type=jnp.float32)
    o_ref[...] = _mm_epilogue(y, sb_ref, r_ref, relu, o_ref.dtype)


def _fused_mm_kernel_multi(*refs, relu, has_residual):
    """K-tiled path (kept for large-K generality): f32 VMEM accumulator."""
    if has_residual:
        a_ref, b_ref, sb_ref, r_ref, o_ref, acc_ref = refs
    else:
        a_ref, b_ref, sb_ref, o_ref, acc_ref = refs
        r_ref = None
    k = pl.program_id(2)
    prod = jnp.dot(a_ref[...], b_ref[...], preferred_element_type=jnp.float32)

    @pl.when(k == 0)
    def _():
        acc_ref[...] = prod          # direct store, no zero-init read-modify-write

    @pl.when(k > 0)
    def _():
        acc_ref[...] += prod

    @pl.when(k == pl.num_programs(2) - 1)
    def _():
        o_ref[...] = _mm_epilogue(acc_ref[...], sb_ref, r_ref, relu, o_ref.dtype)


def _pick_tk(K, tm, tn, budget_bytes=12 * 1024 * 1024):
    """Largest 128-multiple divisor of K whose double-buffered bf16 A/B tiles plus the
    f32 accumulator fit a conservative VMEM budget (safe on v7x's 64 MiB/TC too)."""
    nmax = K // 128
    for n in range(nmax, 0, -1):
        if nmax % n:
            continue
        tk = n * 128
        if 2 * 2 * (tm + tn) * tk + 4 * tm * tn <= budget_bytes:
            return tk
    return 128


def _pick_tiles(M, N, K):
    # tm: biggest exact tile; deep-stage tails (M = 8 / 32) use a full-dim block.
    if M % 256 == 0:
        tm = 256
    elif M % 128 == 0:
        tm = 128
    else:
        tm = M
    # tn: lane-dense, as large as divides N.  On dual-TensorCore chips prefer a j-split
    # (disjoint weight halves per core) instead of ever shrinking tm.
    if N % 128 != 0:
        tn = N
    else:
        tn = 256 if N % 256 == 0 else 128
        if _num_tensorcores() >= 2 and (M // tm) < 2 and (N // tn) < 2 and N >= 256:
            tn = 128
    tk = _pick_tk(K, tm, tn)
    return tm, tn, tk


def fused_matmul(a, b, scale_bias, residual=None, relu=False,
                 out_dtype=jnp.bfloat16):
    """Tiled bf16 MXU matmul with f32 accumulate and a fused folded-BN scale/bias,
    optional residual add and ReLU epilogue."""
    M, K = a.shape
    K2, N = b.shape
    assert K == K2, (K, K2)
    assert K % 128 == 0, K

    a = a.astype(jnp.bfloat16)
    b = b.astype(jnp.bfloat16)
    sb = scale_bias.reshape(2, N).astype(jnp.float32)

    tm, tn, tk = _pick_tiles(M, N, K)
    k_steps = K // tk
    has_residual = residual is not None

    inputs = [a, b, sb]
    if has_residual:
        inputs.append(residual.astype(jnp.bfloat16))

    if k_steps == 1:
        in_specs = [
            pl.BlockSpec((tm, tk), lambda i, j: (i, 0)),
            pl.BlockSpec((tk, tn), lambda i, j: (0, j)),
            pl.BlockSpec((2, tn), lambda i, j: (0, j)),
        ]
        if has_residual:
            in_specs.append(pl.BlockSpec((tm, tn), lambda i, j: (i, j)))
        grid = (M // tm, N // tn)
        out_spec = pl.BlockSpec((tm, tn), lambda i, j: (i, j))
        kernel = functools.partial(_fused_mm_kernel_1step, relu=relu,
                                   has_residual=has_residual)
        scratch = []
        semantics = ("parallel", "parallel")
    else:
        in_specs = [
            pl.BlockSpec((tm, tk), lambda i, j, k: (i, k)),
            pl.BlockSpec((tk, tn), lambda i, j, k: (k, j)),
            pl.BlockSpec((2, tn), lambda i, j, k: (0, j)),
        ]
        if has_residual:
            in_specs.append(pl.BlockSpec((tm, tn), lambda i, j, k: (i, j)))
        grid = (M // tm, N // tn, k_steps)
        out_spec = pl.BlockSpec((tm, tn), lambda i, j, k: (i, j))
        kernel = functools.partial(_fused_mm_kernel_multi, relu=relu,
                                   has_residual=has_residual)
        scratch = [pltpu.VMEM((tm, tn), jnp.float32)]
        semantics = ("parallel", "parallel", "arbitrary")

    return pl.pallas_call(
        kernel,
        out_shape=jax.ShapeDtypeStruct((M, N), out_dtype),
        grid_spec=pltpu.PrefetchScalarGridSpec(
            num_scalar_prefetch=0,
            grid=grid,
            in_specs=in_specs,
            out_specs=out_spec,
            scratch_shapes=scratch,
        ),
        compiler_params=pltpu.CompilerParams(
            dimension_semantics=semantics,
            vmem_limit_bytes=32 * 1024 * 1024),
    )(*inputs)


# ----------------------------------------------------------------------------
# MaxPool 3x3 / stride 2 / pad 1  (XLA jnp.maximum tree; no 9x HBM intermediate)
# ----------------------------------------------------------------------------
def maxpool_3x3_s2_p1(x):
    N, H, W, C = x.shape
    k, stride, pad = 3, 2, 1
    Ho = (H + 2 * pad - k) // stride + 1
    Wo = (W + 2 * pad - k) // stride + 1
    xp = jnp.pad(x, ((0, 0), (pad, pad), (pad, pad), (0, 0)),
                 constant_values=-jnp.inf)
    out = None
    for dy in range(k):
        for dx in range(k):
            w = xp[:, dy:dy + stride * Ho:stride, dx:dx + stride * Wo:stride, :]
            out = w if out is None else jnp.maximum(out, w)
    return out


# ----------------------------------------------------------------------------
# im2col glue (bf16, K axis padded to a multiple of 128 inside the same concat)
# ----------------------------------------------------------------------------
def im2col(x, k, stride, pad, kp):
    N, H, W, C = x.shape
    xp = jnp.pad(x, ((0, 0), (pad, pad), (pad, pad), (0, 0))) if pad else x
    Ho = (H + 2 * pad - k) // stride + 1
    Wo = (W + 2 * pad - k) // stride + 1
    cols = []
    for dy in range(k):
        for dx in range(k):
            cols.append(xp[:, dy:dy + stride * Ho:stride,
                           dx:dx + stride * Wo:stride, :])
    K = k * k * C
    if kp > K:
        cols.append(jnp.zeros((N, Ho, Wo, kp - K), x.dtype))
    patches = jnp.concatenate(cols, axis=-1)  # [N, Ho, Wo, Kp]
    return patches.reshape(N * Ho * Wo, kp), Ho, Wo


def conv_bn(x, w, sb, k, stride, pad, relu, residual=None):
    """conv (no bias) + folded eval-mode BatchNorm (+residual) (+ReLU)."""
    N = x.shape[0]
    cout = w.shape[1]
    patches, Ho, Wo = im2col(x, k, stride, pad, w.shape[0])
    res2d = residual.reshape(-1, cout) if residual is not None else None
    y = fused_matmul(patches, w, sb, residual=res2d, relu=relu)
    return y.reshape(N, Ho, Wo, cout)


# ----------------------------------------------------------------------------
# Deterministic synthetic parameters (ResNet-18 shapes, BN folded into a (2, C)
# scale/bias stack, weights pre-reshaped to [Kp, cout], K-padded to a multiple
# of 128 and cast to bf16 once at init).
# ----------------------------------------------------------------------------
def _keygen(seed):
    key = jax.random.PRNGKey(seed)
    while True:
        key, sub = jax.random.split(key)
        yield sub


def _conv_w(key, cin, cout, k):
    K = k * k * cin
    Kp = _round_up(K, 128)
    w = jax.random.normal(key, (k, k, cin, cout), jnp.float32)
    w = (w * (2.0 / (k * k * cin)) ** 0.5).reshape(K, cout)
    wp = jnp.zeros((Kp, cout), jnp.float32).at[:K].set(w)
    return wp.astype(jnp.bfloat16)


def _bn_fold(key, c):
    k1, k2, k3, k4 = jax.random.split(key, 4)
    gamma = 1.0 + 0.1 * jax.random.normal(k1, (c,), jnp.float32)
    beta = 0.1 * jax.random.normal(k2, (c,), jnp.float32)
    mean = 0.1 * jax.random.normal(k3, (c,), jnp.float32)
    var = 1.0 + 0.05 * jnp.abs(jax.random.normal(k4, (c,), jnp.float32))
    scale = gamma * jax.lax.rsqrt(var + 1e-5)
    bias = beta - mean * scale
    return jnp.stack([scale, bias]).astype(jnp.float32)   # (2, c)


def make_params(seed=0):
    kg = _keygen(seed)
    p = {}
    p["conv1_w"] = _conv_w(next(kg), 3, 64, 7)
    p["bn1_sb"] = _bn_fold(next(kg), 64)

    blocks = []
    in_ch = 64
    for out_ch, layer_stride in [(64, 1), (128, 2), (256, 2), (512, 2)]:
        for b in range(2):
            s = layer_stride if b == 0 else 1
            blk = {"stride": s}
            blk["conv1_w"] = _conv_w(next(kg), in_ch, out_ch, 3)
            blk["bn1_sb"] = _bn_fold(next(kg), out_ch)
            blk["conv2_w"] = _conv_w(next(kg), out_ch, out_ch, 3)
            blk["bn2_sb"] = _bn_fold(next(kg), out_ch)
            if s != 1 or in_ch != out_ch:
                blk["down_w"] = _conv_w(next(kg), in_ch, out_ch, 1)
                blk["dbn_sb"] = _bn_fold(next(kg), out_ch)
            blocks.append(blk)
            in_ch = out_ch
    p["blocks"] = blocks

    p["fc_w"] = jax.random.normal(next(kg), (512, 64), jnp.float32) * (1.0 / 512.0) ** 0.5
    p["fc_b"] = 0.01 * jax.random.normal(next(kg), (64,), jnp.float32)
    return p


# ----------------------------------------------------------------------------
# Forward pass (ResNet-18 backbone, new head Linear(512,64)+ReLU+Dropout)
# ----------------------------------------------------------------------------
def basic_block(x, blk):
    s = blk["stride"]
    identity = x
    out = conv_bn(x, blk["conv1_w"], blk["bn1_sb"], k=3, stride=s, pad=1, relu=True)
    if "down_w" in blk:
        identity = conv_bn(x, blk["down_w"], blk["dbn_sb"],
                           k=1, stride=s, pad=0, relu=False)
    out = conv_bn(out, blk["conv2_w"], blk["bn2_sb"],
                  k=3, stride=1, pad=1, relu=True, residual=identity)
    return out


def video_encoder_forward(x_nchw, params):
    x = jnp.transpose(x_nchw, (0, 2, 3, 1)).astype(jnp.bfloat16)  # NCHW -> NHWC bf16
    # stem: conv7x7/2 + BN + ReLU, maxpool 3x3/2
    x = conv_bn(x, params["conv1_w"], params["bn1_sb"], k=7, stride=2, pad=3, relu=True)
    x = maxpool_3x3_s2_p1(x)
    # 4 residual stages, 2 BasicBlocks each
    for blk in params["blocks"]:
        x = basic_block(x, blk)
    # head: global avg pool -> Linear(512, 64) -> ReLU -> Dropout (eval = identity)
    pooled = jnp.mean(x.astype(jnp.float32), axis=(1, 2))            # [N, 512]
    out = jnp.maximum(jnp.dot(pooled, params["fc_w"]) + params["fc_b"], 0.0)
    return out  # [N, 64] f32


if __name__ == "__main__":
    key = jax.random.PRNGKey(0)
    x = jax.random.normal(key, (2, 3, 64, 64), jnp.float32)  # NCHW like PyTorch
    params = make_params(0)
    out = video_encoder_forward(x, params)
    out = jax.block_until_ready(out)
    assert out.shape == (2, 64), out.shape
    assert bool(jnp.all(jnp.isfinite(out)))
    assert bool(jnp.all(out >= 0.0))  # post-ReLU head
    print("KERNEL_OK")
</pallas_src>

<mosaic_0001>
module attributes {stable_mosaic.version = 11 : i64} {
  func.func @_fused_mm_kernel_1step(%arg0: i32, %arg1: i32, %arg2: memref<256x256xbf16, #tpu.memory_space<vmem>>, %arg3: memref<256x64xbf16, #tpu.memory_space<vmem>>, %arg4: memref<2x64xf32, #tpu.memory_space<vmem>>, %arg5: memref<256x64xbf16, #tpu.memory_space<vmem>>) attributes {dimension_semantics = [#tpu.dimension_semantics<parallel>, #tpu.dimension_semantics<parallel>], iteration_bounds = array<i64: 8, 1>, scalar_prefetch = 0 : i64, scratch_operands = 0 : i64, tpu.core_type = #tpu.core_type<tc>, window_params = [{transform_indices = @transform_0, window_bounds = array<i64: 256, 256>}, {transform_indices = @transform_1, window_bounds = array<i64: 256, 64>}, {transform_indices = @transform_2, window_bounds = array<i64: 2, 64>}, {transform_indices = @transform_3, window_bounds = array<i64: 256, 64>}]} {
    %c0 = arith.constant 0 : index
    %c0_0 = arith.constant 0 : index
    %0 = vector.load %arg2[%c0, %c0_0] : memref<256x256xbf16, #tpu.memory_space<vmem>>, vector<256x256xbf16>
    %c0_1 = arith.constant 0 : index
    %c0_2 = arith.constant 0 : index
    %1 = vector.load %arg3[%c0_1, %c0_2] : memref<256x64xbf16, #tpu.memory_space<vmem>>, vector<256x64xbf16>
    %cst = arith.constant dense<0.000000e+00> : vector<256x64xf32>
    %2 = tpu.matmul %0, %1, %cst {dimension_numbers = #tpu.dot_dimension_numbers<[1], [0], [0], [1], [0, 0, 1, 1], [], []>} : vector<256x256xbf16>, vector<256x64xbf16>, vector<256x64xf32> -> vector<256x64xf32>
    %c0_3 = arith.constant 0 : index
    %c0_4 = arith.constant 0 : index
    %3 = vector.load %arg4[%c0_3, %c0_4] : memref<2x64xf32, #tpu.memory_space<vmem>>, vector<1x64xf32>
    %4 = vector.broadcast %3 : vector<1x64xf32> to vector<256x64xf32>
    %5 = arith.mulf %2, %4 : vector<256x64xf32>
    %c1 = arith.constant 1 : index
    %c0_5 = arith.constant 0 : index
    %6 = vector.load %arg4[%c1, %c0_5] : memref<2x64xf32, #tpu.memory_space<vmem>>, vector<1x64xf32>
    %7 = vector.broadcast %6 : vector<1x64xf32> to vector<256x64xf32>
    %8 = arith.addf %5, %7 : vector<256x64xf32>
    %cst_6 = arith.constant 0.000000e+00 : f32
    %9 = vector.broadcast %cst_6 : f32 to vector<256x64xf32>
    %10 = arith.maximumf %8, %9 : vector<256x64xf32>
    %11 = arith.truncf %10 : vector<256x64xf32> to vector<256x64xbf16>
    %c0_7 = arith.constant 0 : index
    %c0_8 = arith.constant 0 : index
    %12 = vector.load %arg5[%c0_7, %c0_8] : memref<256x64xbf16, #tpu.memory_space<vmem>>, vector<256x64xbf16>
    tpu.vector_store %arg5[%c0_7, %c0_8], %11 {strides = array<i32>} : memref<256x64xbf16, #tpu.memory_space<vmem>>, vector<256x64xbf16>,
    return
  }
  func.func @transform_0(%arg0: i32, %arg1: i32) -> (i32, i32) {
    %c0_i32 = arith.constant 0 : i32
    %c0_i32_0 = arith.constant 0 : i32
    return %arg0, %c0_i32 : i32, i32
  }
  func.func @transform_1(%arg0: i32, %arg1: i32) -> (i32, i32) {
    %c0_i32 = arith.constant 0 : i32
    %c0_i32_0 = arith.constant 0 : i32
    return %c0_i32, %arg1 : i32, i32
  }
  func.func @transform_2(%arg0: i32, %arg1: i32) -> (i32, i32) {
    %c0_i32 = arith.constant 0 : i32
    %c0_i32_0 = arith.constant 0 : i32
    return %c0_i32, %arg1 : i32, i32
  }
  func.func @transform_3(%arg0: i32, %arg1: i32) -> (i32, i32) {
    %c0_i32 = arith.constant 0 : i32
    return %arg0, %arg1 : i32, i32
  }
}

</mosaic_0001>

<bundles_post_ra>
// kernel: tpu_custom_call.1
= control target key start
LH: loop header
LB: loop body
LE: loop exit
PB: predicated region body
PF: predicated region fallthrough
CT: control target
= control target key end

     0   :  { %8 = vsyncpa [#allocation3], 0  ;;  %s1807_s0 = inlined_call_operand.hbm [shape: bf16[2048,256], index: 0, kind: input, shape index: {}]   ;;  %s1808_s1 = inlined_call_operand.vmem [shape: bf16[256,64], index: 1, kind: input, shape index: {}]   ;;  %s1809_s2 = inlined_call_operand.vmem [shape: f32[2,64], index: 2, kind: input, shape index: {}]   ;;  %s1810_s3 = inlined_call_operand.vmem [shape: bf16[2048,64], index: 3, kind: output, shape index: {}]  }
   0x1   :  { %10 = vsyncpa [#allocation3 + $0x1], 0  ;;  %s1466_s12 = smov 0   ;;  %s1468_s13 = smov 0  }
   0x2   :  { %s1470_s14 = smov 0   ;;  %s1472_s15 = smov 0  }
   0x3   :  { %s1474_s16 = smov 0   ;;  %s1476_s17 = smov 0  }
   0x4 LB: > { %s1029_s18 = sadd.s32 4294967295, %s1442_s17   ;;  %s28_s19 = sadd.s32 1, %s1438_s16  ;;  %s1442_s17 = sphi %s1476_s17, %s16_s17   ;;  %s1438_s16 = sphi %s1474_s16, %s1817_s16   ;;  %s1434_s15 = sphi %s1472_s15, %s1816_s15   ;;  %s1430_s14 = sphi %s1470_s14, %s1815_s14   ;;  %s1426_s13 = sphi %s1468_s13, %s1814_s13   ;;  %s1422_s12 = sphi %s1466_s12, %s1813_s12  }
   0x5   : > { %p30_p0 = scmp.ge.s32.totalorder %s28_s19, 8  ;;  %s35_s20 = sadd.s32 1, %s1430_s14 }
   0x6   : > { %p42_p1 = scmp.ne.s32.totalorder %s1430_s14, %s1426_s13  ;;  %p43_p2 = scmp.eq.s32.totalorder %s1442_s17, 0 }
   0x7   : > { %s1819_s19 = smov (%p30_p0, %s28_s19), 0  ;;  %p48_p4 = scmp.ne.s32.totalorder %s1426_s13, %s1422_s12 }
   0x8   : > { %p1502_p3 = por %p43_p2, %p42_p1  ;;  %s32_s22 = ssub.s32 %s1438_s16, %s1819_s19 }
   0x9   : > { %p49_p5 = scmp.eq.s32.totalorder %s1029_s18, 0  ;;  %p33_p6 = scmp.eq.s32.totalorder %s32_s22, 0 }
   0xa   : > { %p1309_p8 = scmp.lt.s32.totalorder %s1442_s17, 8  ;;  %s166_s25 = sand.u32 1, %s1430_s14  }
   0xb   : > { %p1509_p7 = por %p49_p5, %p48_p4  ;;  %s1238_s26 = sshll.u32 %s1438_s16, 8 }
   0xc   : > { %s1515_s24 = scalar_select %p33_p6, %s1430_s14, %s35_s20  }
   0xd   : > { %s1035_s27 = sshll.u32 %s166_s25, 8  ;;  %s176_s30 = scalar_lea.hbm %s1807_s0, %s1238_s26 }
   0xe   : > { %s177_s4 = sshll.u32 %s176_s30, 4  ;;  %s170_s5 = scalar_lea.vmem [#allocation2], %s1035_s27  ;;  %s178_s4 = int_to_ptr.hbm [resolvable:$true] %s177_s4 }
   0xf   : > { %s179_s6 = sshll.u32 %s170_s5, 4  ;;  %p1306_p9 = pnand %p1309_p8, %p1502_p3  ;;  %s180_s6 = int_to_ptr.vmem [resolvable:$true] %s179_s6 }
  0x10   : > { %p1039_p10 = scmp.ge.s32.totalorder %s1442_s17, 1  ;;  %p187_p11 = scmp.lt.s32.totalorder %s1442_s17, 9 }
  0x11   : > { %s167_s7 = scalar_lea.sflag [#allocation3], %s166_s25  ;;  %s1444_s8 = smov 128  }
  0x12   : > { %s1445_s9 = smov 8   ;;  %p188_p12 = pnand %p1039_p10, %p187_p11 }
  0x13   : > { %1308 = dma.hbm_to_vmem [thread:$0]  (!%p1306_p9), %s178_s4, 4096, %s180_s6, %s167_s7, %s1444_s8, %s1444_s8, %s1445_s9  }
  0x14   : > { %191 = sbr.rel (%p188_p12) target bundleno = 322 (0x142), region = 32  ;;  %s193_s10 = sand.u32 (!%p188_p12), 1, %s1426_s13  }
  0x15   : > { %s1040_s11 = sshll.u32 (!%p188_p12), %s193_s10, 8  ;;  %s194_s12 = scalar_lea.sflag (!%p188_p12), [#allocation3], %s193_s10 }
  0x16   : > { %s1527_s18 = scalar_lea.vmem (!%p188_p12), [#allocation2], %s1040_s11 }
  0x19   : > { %1417 = dma.done.wait (%p1509_p7), %s194_s12, 4096  }
  0x1a   : > { %1419 = vsyncadd (%p1509_p7), %s194_s12, 4294963200  ;;  %v1278_v0 = vld [vmem:[%s1808_s1 + $0x38] sm:$0xff]  ;;  %v1277_v2 = vld [vmem:[%s1808_s1 + $0x30] sm:$0xff]  ;;  %s1041_s7 = sshll.u32 %s1434_s15, 5  ;;  %vm880_vm0 = vcmask 519168  }
  0x1b   : > { %v1286_v1 = vld [vmem:[%s1808_s1 + $0x78] sm:$0xff]  ;;  %570 = vmatpush.bf16.msra.mxu0 %v1278_v0  ;;  %1287 = vmatpush.bf16.msra.mxu2 %v1278_v0  ;;  %v1285_v3 = vld [vmem:[%s1808_s1 + $0x70] sm:$0xff]  ;;  %v1276_v4 = vld [vmem:[%s1808_s1 + $0x28] sm:$0xff]  ;;  %p242_p13 = scmp.lt.s32.totalorder %s1041_s7, 255 }
  0x1c   : > { %659 = vmatpush.bf16.msra.mxu1 %v1286_v1  ;;  %1295 = vmatpush.bf16.msra.mxu3 %v1286_v1  ;;  %v1284_v5 = vld [vmem:[%s1808_s1 + $0x68] sm:$0xff]  ;;  %v1275_v6 = vld [vmem:[%s1808_s1 + $0x20] sm:$0xff]  ;;  %v1274_v8 = vld [vmem:[%s1808_s1 + $0x18] sm:$0xff] }
  0x1d   : > { %v1283_v7 = vld [vmem:[%s1808_s1 + $0x60] sm:$0xff]  ;;  %v1282_v9 = vld [vmem:[%s1808_s1 + $0x58] sm:$0xff]  ;;  %v1273_v10 = vld [vmem:[%s1808_s1 + $0x10] sm:$0xff]  ;;  %s1821_s7 = smov (!%p242_p13, %s1041_s7), 255 }
  0x1e   : > { %v1281_v11 = vld [vmem:[%s1808_s1 + $0x50] sm:$0xff]  ;;  %v1272_v12 = vld [vmem:[%s1808_s1 + $0x8] sm:$0xff]  ;;  %v1271_v14 = vld [vmem:[%s1808_s1] sm:$0xff]  ;;  %s1042_s11 = sshll.u32 %s1821_s7, 2 }
  0x1f   : > { %571 = vmatpush.bf16.msra.mxu0 %v1277_v2  ;;  %1288 = vmatpush.bf16.msra.mxu2 %v1277_v2  ;;  %v1280_v13 = vld [vmem:[%s1808_s1 + $0x48] sm:$0xff]  ;;  %v1279_v15 = vld [vmem:[%s1808_s1 + $0x40] sm:$0xff]  ;;  %v1053_v28 = vld [vmem:[%s1527_s18 + $0x10] sm:$0xf]  ;;  %s1661_s20 = scalar_lea.vmem %s1810_s3, %s1042_s11 }
  0x20   : > { %660 = vmatpush.bf16.msra.mxu1 %v1285_v3  ;;  %1296 = vmatpush.bf16.msra.mxu3 %v1285_v3  ;;  %v1045_v16 = vld [vmem:[%s1527_s18] sm:$0xf]  ;;  %v1240_v17 = vld [vmem:[%s1527_s18 + $0x4] sm:$0xf0]  ;;  %v1239_v20 = vld [vmem:[%s1527_s18 + $0x4] sm:$0xf] }
  0x21   : > { %v1109_v18 = vld [vmem:[%s1527_s18 + $0x80] sm:$0xf]  ;;  %v1256_v19 = vld [vmem:[%s1527_s18 + $0x84] sm:$0xf0]  ;;  %v1047_v21 = vld [vmem:[%s1527_s18 + $0x8] sm:$0xf0]  ;;  %v1046_v24 = vor.u32 %v1240_v17, %v1045_v16 }
  0x22   : > { %v1255_v22 = vld [vmem:[%s1527_s18 + $0x84] sm:$0xf]  ;;  %v1111_v23 = vld [vmem:[%s1527_s18 + $0x88] sm:$0xf0]  ;;  %v1110_v25 = vor.u32 %v1256_v19, %v1109_v18  ;;  %v1050_v26 = vor.u32 %v1239_v20, %v1047_v21  ;;  %v1242_v29 = vld [vmem:[%s1527_s18 + $0x14] sm:$0xf0] }
  0x23   : > { %572 = vmatpush.bf16.msra.mxu0 %v1276_v4  ;;  %1289 = vmatpush.bf16.msra.mxu2 %v1276_v4  ;;  %v1114_v27 = vor.u32 %v1255_v22, %v1111_v23  ;;  %v1117_v30 = vld [vmem:[%s1527_s18 + $0x90] sm:$0xf]  ;;  %v1258_v31 = vld [vmem:[%s1527_s18 + $0x94] sm:$0xf0]  ;;  %v1241_v32 = vld [vmem:[%s1527_s18 + $0x14] sm:$0xf]  ;;  %v1054_v36 = vor.u32 %v1242_v29, %v1053_v28 }
  0x24   : > { %661 = vmatpush.bf16.msra.mxu1 %v1284_v5  ;;  %1297 = vmatpush.bf16.msra.mxu3 %v1284_v5  ;;  %v1055_v33 = vld [vmem:[%s1527_s18 + $0x18] sm:$0xf0]  ;;  %v1257_v34 = vld [vmem:[%s1527_s18 + $0x94] sm:$0xf]  ;;  %v1118_v37 = vor.u32 %v1258_v31, %v1117_v30  ;;  %v1061_v40 = vld [vmem:[%s1527_s18 + $0x20] sm:$0xf] }
  0x25   : > { %v1119_v35 = vld [vmem:[%s1527_s18 + $0x98] sm:$0xf0]  ;;  %v1058_v38 = vor.u32 %v1241_v32, %v1055_v33  ;;  %v1244_v41 = vld [vmem:[%s1527_s18 + $0x24] sm:$0xf0]  ;;  %v1125_v42 = vld [vmem:[%s1527_s18 + $0xa0] sm:$0xf] }
  0x26   : > { %v1122_v39 = vor.u32 %v1257_v34, %v1119_v35  ;;  %v1260_v43 = vld [vmem:[%s1527_s18 + $0xa4] sm:$0xf0]  ;;  %v1243_v44 = vld [vmem:[%s1527_s18 + $0x24] sm:$0xf]  ;;  %v1063_v45 = vld [vmem:[%s1527_s18 + $0x28] sm:$0xf0]  ;;  %v1062_v48 = vor.u32 %v1244_v41, %v1061_v40 }
  0x27   : > { %573 = vmatpush.bf16.msra.mxu0 %v1275_v6  ;;  %1290 = vmatpush.bf16.msra.mxu2 %v1275_v6  ;;  %v1259_v46 = vld [vmem:[%s1527_s18 + $0xa4] sm:$0xf]  ;;  %v1127_v47 = vld [vmem:[%s1527_s18 + $0xa8] sm:$0xf0]  ;;  %v1126_v49 = vor.u32 %v1260_v43, %v1125_v42  ;;  %v1066_v50 = vor.u32 %v1243_v44, %v1063_v45  ;;  %v1069_v52 = vld [vmem:[%s1527_s18 + $0x30] sm:$0xf] }
  0x28   : > { %662 = vmatpush.bf16.msra.mxu1 %v1283_v7  ;;  %1298 = vmatpush.bf16.msra.mxu3 %v1283_v7  ;;  %v1130_v51 = vor.u32 %v1259_v46, %v1127_v47  ;;  %v1246_v53 = vld [vmem:[%s1527_s18 + $0x34] sm:$0xf0]  ;;  %v1133_v54 = vld [vmem:[%s1527_s18 + $0xb0] sm:$0xf]  ;;  %v1245_v56 = vld [vmem:[%s1527_s18 + $0x34] sm:$0xf] }
  0x29   : > { %v1262_v55 = vld [vmem:[%s1527_s18 + $0xb4] sm:$0xf0]  ;;  %v1071_v57 = vld [vmem:[%s1527_s18 + $0x38] sm:$0xf0]  ;;  %v1261_v58 = vld [vmem:[%s1527_s18 + $0xb4] sm:$0xf]  ;;  %v1070_v60 = vor.u32 %v1246_v53, %v1069_v52 }
  0x2a   : > { %v1135_v59 = vld [vmem:[%s1527_s18 + $0xb8] sm:$0xf0]  ;;  %v1134_v61 = vor.u32 %v1262_v55, %v1133_v54  ;;  %v1074_v62 = vor.u32 %v1245_v56, %v1071_v57  ;;  %v1077_v0 = vld [vmem:[%s1527_s18 + $0x40] sm:$0xf]  ;;  %v1248_v1 = vld [vmem:[%s1527_s18 + $0x44] sm:$0xf0] }
  0x2b   : > { %574 = vmatpush.bf16.msra.mxu0 %v1274_v8  ;;  %1291 = vmatpush.bf16.msra.mxu2 %v1274_v8  ;;  %v1138_v63 = vor.u32 %v1261_v58, %v1135_v59  ;;  %v1141_v2 = vld [vmem:[%s1527_s18 + $0xc0] sm:$0xf]  ;;  %v1264_v3 = vld [vmem:[%s1527_s18 + $0xc4] sm:$0xf0]  ;;  %v1247_v4 = vld [vmem:[%s1527_s18 + $0x44] sm:$0xf]  ;;  %v1078_v8 = vor.u32 %v1248_v1, %v1077_v0 }
  0x2c   : > { %663 = vmatpush.bf16.msra.mxu1 %v1282_v9  ;;  %1299 = vmatpush.bf16.msra.mxu3 %v1282_v9  ;;  %v1079_v5 = vld [vmem:[%s1527_s18 + $0x48] sm:$0xf0]  ;;  %v1263_v6 = vld [vmem:[%s1527_s18 + $0xc4] sm:$0xf]  ;;  %v1142_v9 = vor.u32 %v1264_v3, %v1141_v2  ;;  %v1249_v16 = vld [vmem:[%s1527_s18 + $0x54] sm:$0xf] }
  0x2d   : > { %v1143_v7 = vld [vmem:[%s1527_s18 + $0xc8] sm:$0xf0]  ;;  %v1087_v17 = vld [vmem:[%s1527_s18 + $0x58] sm:$0xf0]  ;;  %v1265_v18 = vld [vmem:[%s1527_s18 + $0xd4] sm:$0xf] }
  0x2e   : > { %v1151_v19 = vld [vmem:[%s1527_s18 + $0xd8] sm:$0xf0]  ;;  %v1090_v22 = vor.u32 %v1249_v16, %v1087_v17  ;;  %v1251_v28 = vld [vmem:[%s1527_s18 + $0x64] sm:$0xf]  ;;  %v1095_v29 = vld [vmem:[%s1527_s18 + $0x68] sm:$0xf0] }
  0x2f   : > { %575 = vmatpush.bf16.msra.mxu0 %v1273_v10  ;;  %1292 = vmatpush.bf16.msra.mxu2 %v1273_v10  ;;  %v1082_v10 = vor.u32 %v1247_v4, %v1079_v5  ;;  %v1154_v23 = vor.u32 %v1265_v18, %v1151_v19  ;;  %v1267_v30 = vld [vmem:[%s1527_s18 + $0xe4] sm:$0xf]  ;;  %v1159_v31 = vld [vmem:[%s1527_s18 + $0xe8] sm:$0xf0]  ;;  %v1098_v34 = vor.u32 %v1251_v28, %v1095_v29  ;;  %v1253_v40 = vld [vmem:[%s1527_s18 + $0x74] sm:$0xf] }
  0x30   : > { %664 = vmatpush.bf16.msra.mxu1 %v1281_v11  ;;  %1300 = vmatpush.bf16.msra.mxu3 %v1281_v11  ;;  %v1146_v11 = vor.u32 %v1263_v6, %v1143_v7  ;;  %v1162_v35 = vor.u32 %v1267_v30, %v1159_v31  ;;  %v1103_v41 = vld [vmem:[%s1527_s18 + $0x78] sm:$0xf0]  ;;  %v1269_v42 = vld [vmem:[%s1527_s18 + $0xf4] sm:$0xf]  ;;  %v1654_v52 = vld [vmem:[%s1809_s2 + $0x1] ss:$0 sm:$0xff] }
  0x31   : > { %v1167_v43 = vld [vmem:[%s1527_s18 + $0xf8] sm:$0xf0]  ;;  %v1106_v46 = vor.u32 %v1253_v40, %v1103_v41 }
  0x32   : > { %v1170_v47 = vor.u32 %v1269_v42, %v1167_v43 }
  0x33   : > { %576 = vmatpush.bf16.msra.mxu0 %v1272_v12  ;;  %1293 = vmatpush.bf16.msra.mxu2 %v1272_v12  ;;  %v1085_v12 = vld [vmem:[%s1527_s18 + $0x50] sm:$0xf] }
  0x34   : > { %665 = vmatpush.bf16.msra.mxu1 %v1280_v13  ;;  %1301 = vmatpush.bf16.msra.mxu3 %v1280_v13  ;;  %v1250_v13 = vld [vmem:[%s1527_s18 + $0x54] sm:$0xf0] }
  0x35   : > { %v1086_v20 = vor.u32 %v1250_v13, %v1085_v12 }
  0x37   : > { %577 = vmatpush.bf16.msra.mxu0 %v1271_v14  ;;  %1294 = vmatpush.bf16.msra.mxu2 %v1271_v14  ;;  %v1149_v14 = vld [vmem:[%s1527_s18 + $0xd0] sm:$0xf] }
  0x38   : > { %666 = vmatpush.bf16.msra.mxu1 %v1279_v15  ;;  %1302 = vmatpush.bf16.msra.mxu3 %v1279_v15  ;;  %v1266_v15 = vld [vmem:[%s1527_s18 + $0xd4] sm:$0xf0] }
  0x39   : > { %v1150_v21 = vor.u32 %v1266_v15, %v1149_v14 }
  0x3a   : > { %578 = vmatmul.bf16.vlgmr.msra.gmra.mxu0 %v1046_v24  ;;  %618 = vmatmul.bf16.vlgmr.msra.gmra.mxu2 %v1110_v25  ;;  %v1093_v24 = vld [vmem:[%s1527_s18 + $0x60] sm:$0xf]  ;;  %v1252_v25 = vld [vmem:[%s1527_s18 + $0x64] sm:$0xf0] }
  0x3b   : > { %667 = vmatmul.bf16.vlgmr.msra.gmra.mxu1 %v1050_v26  ;;  %707 = vmatmul.bf16.vlgmr.msra.gmra.mxu3 %v1114_v27  ;;  %v1157_v26 = vld [vmem:[%s1527_s18 + $0xe0] sm:$0xf]  ;;  %v1268_v27 = vld [vmem:[%s1527_s18 + $0xe4] sm:$0xf0]  ;;  %v1094_v32 = vor.u32 %v1252_v25, %v1093_v24 }
  0x3c   : > { %v1158_v33 = vor.u32 %v1268_v27, %v1157_v26 }
  0x4a   : > { %583 = vmatmul.bf16.gmra.mxu0 %v1054_v36  ;;  %623 = vmatmul.bf16.gmra.mxu2 %v1118_v37  ;;  %v1101_v36 = vld [vmem:[%s1527_s18 + $0x70] sm:$0xf]  ;;  %v1254_v37 = vld [vmem:[%s1527_s18 + $0x74] sm:$0xf0] }
  0x4b   : > { %672 = vmatmul.bf16.gmra.mxu1 %v1058_v38  ;;  %712 = vmatmul.bf16.gmra.mxu3 %v1122_v39  ;;  %v1165_v38 = vld [vmem:[%s1527_s18 + $0xf0] sm:$0xf]  ;;  %v1270_v39 = vld [vmem:[%s1527_s18 + $0xf4] sm:$0xf0]  ;;  %v1102_v44 = vor.u32 %v1254_v37, %v1101_v36 }
  0x4c   : > { %v1166_v45 = vor.u32 %v1270_v39, %v1165_v38 }
  0x5a   : > { %588 = vmatmul.bf16.gmra.mxu0 %v1062_v48  ;;  %628 = vmatmul.bf16.gmra.mxu2 %v1126_v49  ;;  %v1649_v49 = vld [vmem:[%s1809_s2] ss:$0 sm:$0xff] }
  0x5b   : > { %677 = vmatmul.bf16.gmra.mxu1 %v1066_v50  ;;  %717 = vmatmul.bf16.gmra.mxu3 %v1130_v51 }
  0x6a   : > { %593 = vmatmul.bf16.gmra.mxu0 %v1070_v60  ;;  %633 = vmatmul.bf16.gmra.mxu2 %v1134_v61 }
  0x6b   : > { %682 = vmatmul.bf16.gmra.mxu1 %v1074_v62  ;;  %722 = vmatmul.bf16.gmra.mxu3 %v1138_v63 }
  0x7a   : > { %598 = vmatmul.bf16.gmra.mxu0 %v1078_v8  ;;  %638 = vmatmul.bf16.gmra.mxu2 %v1142_v9 }
  0x7b   : > { %687 = vmatmul.bf16.gmra.mxu1 %v1082_v10  ;;  %727 = vmatmul.bf16.gmra.mxu3 %v1146_v11 }
  0x8a   : > { %603 = vmatmul.bf16.gmra.mxu0 %v1086_v20  ;;  %643 = vmatmul.bf16.gmra.mxu2 %v1150_v21 }
  0x8b   : > { %692 = vmatmul.bf16.gmra.mxu1 %v1090_v22  ;;  %732 = vmatmul.bf16.gmra.mxu3 %v1154_v23 }
  0x9a   : > { %608 = vmatmul.bf16.gmra.mxu0 %v1094_v32  ;;  %648 = vmatmul.bf16.gmra.mxu2 %v1158_v33 }
  0x9b   : > { %697 = vmatmul.bf16.gmra.mxu1 %v1098_v34  ;;  %737 = vmatmul.bf16.gmra.mxu3 %v1162_v35 }
  0xaa   : > { %613 = vmatmul.bf16.gmra.mxu0 %v1102_v44  ;;  %653 = vmatmul.bf16.gmra.mxu2 %v1166_v45 }
  0xab   : > { %702 = vmatmul.bf16.gmra.mxu1 %v1106_v46  ;;  %742 = vmatmul.bf16.gmra.mxu3 %v1170_v47 }
  0xb7   : > { %v579_v48 = vpop.f32.mrf.mxu0 }
  0xb8   : > { %v668_v50 = vpop.f32.mrf.mxu1 }
  0xb9   : > { %v669_v51 = vadd.f32 %v668_v50, %v579_v48 }
  0xbb   : > { %v750_v53 = vmul.f32 %v1649_v49, %v669_v51 }
  0xbd   : > { %v784_v54 = vadd.f32 %v1654_v52, %v750_v53  ;;  %v619_v55 = vpop.f32.mrf.mxu2 }
  0xbe   : > { %v708_v56 = vpop.f32.mrf.mxu3 }
  0xbf   : > { %v816_v57 = vmax.f32 %v784_v54, 0.0  ;;  %v709_v58 = vadd.f32 %v708_v56, %v619_v55  ;;  %v581_v59 = vpop.f32.mrf.mxu0 }
  0xc0   : > { %v670_v60 = vpop.f32.mrf.mxu1 }
  0xc1   : > { %v848_v61 = vpack.c.bf16 %v816_v57, %v816_v57  ;;  %v766_v62 = vmul.f32 %v1649_v49, %v709_v58  ;;  %v671_v63 = vadd.f32 %v670_v60, %v581_v59 }
  0xc3   : > { %881 = vst.msk [vmem:[%s1661_s20] sm:$0xf] %vm880_vm0, %v848_v61  ;;  %v800_v0 = vadd.f32 %v1654_v52, %v766_v62  ;;  %v751_v1 = vmul.f32 %v1649_v49, %v671_v63 }
  0xc5   : > { %v832_v2 = vmax.f32 %v800_v0, 0.0  ;;  %v785_v3 = vadd.f32 %v1654_v52, %v751_v1  ;;  %v621_v4 = vpop.f32.mrf.mxu2 }
  0xc6   : > { %v710_v5 = vpop.f32.mrf.mxu3 }
  0xc7   : > { %v864_v6 = vpack.c.bf16 %v832_v2, %v832_v2  ;;  %v817_v7 = vmax.f32 %v785_v3, 0.0  ;;  %v711_v8 = vadd.f32 %v710_v5, %v621_v4  ;;  %v584_v9 = vpop.f32.mrf.mxu0 }
  0xc8   : > { %v673_v10 = vpop.f32.mrf.mxu1 }
  0xc9   : > { %897 = vst.msk [vmem:[%s1661_s20 + $0x40] sm:$0xf] %vm880_vm0, %v864_v6  ;;  %v849_v11 = vpack.c.bf16 %v817_v7, %v817_v7  ;;  %v767_v12 = vmul.f32 %v1649_v49, %v711_v8  ;;  %v674_v13 = vadd.f32 %v673_v10, %v584_v9 }
  0xcb   : > { %882 = vst.msk [vmem:[%s1661_s20 + $0x4] sm:$0xf] %vm880_vm0, %v849_v11  ;;  %v801_v14 = vadd.f32 %v1654_v52, %v767_v12  ;;  %v752_v15 = vmul.f32 %v1649_v49, %v674_v13 }
  0xcd   : > { %v833_v16 = vmax.f32 %v801_v14, 0.0  ;;  %v786_v17 = vadd.f32 %v1654_v52, %v752_v15  ;;  %v624_v18 = vpop.f32.mrf.mxu2 }
  0xce   : > { %v713_v19 = vpop.f32.mrf.mxu3 }
  0xcf   : > { %v865_v20 = vpack.c.bf16 %v833_v16, %v833_v16  ;;  %v818_v21 = vmax.f32 %v786_v17, 0.0  ;;  %v714_v22 = vadd.f32 %v713_v19, %v624_v18  ;;  %v586_v23 = vpop.f32.mrf.mxu0 }
  0xd0   : > { %v675_v24 = vpop.f32.mrf.mxu1 }
  0xd1   : > { %898 = vst.msk [vmem:[%s1661_s20 + $0x44] sm:$0xf] %vm880_vm0, %v865_v20  ;;  %v850_v25 = vpack.c.bf16 %v818_v21, %v818_v21  ;;  %v768_v26 = vmul.f32 %v1649_v49, %v714_v22  ;;  %v676_v27 = vadd.f32 %v675_v24, %v586_v23 }
  0xd3   : > { %883 = vst.msk [vmem:[%s1661_s20 + $0x8] sm:$0xf] %vm880_vm0, %v850_v25  ;;  %v802_v28 = vadd.f32 %v1654_v52, %v768_v26  ;;  %v753_v29 = vmul.f32 %v1649_v49, %v676_v27 }
  0xd5   : > { %v834_v30 = vmax.f32 %v802_v28, 0.0  ;;  %v787_v31 = vadd.f32 %v1654_v52, %v753_v29  ;;  %v626_v32 = vpop.f32.mrf.mxu2 }
  0xd6   : > { %v715_v33 = vpop.f32.mrf.mxu3 }
  0xd7   : > { %v866_v34 = vpack.c.bf16 %v834_v30, %v834_v30  ;;  %v819_v35 = vmax.f32 %v787_v31, 0.0  ;;  %v716_v36 = vadd.f32 %v715_v33, %v626_v32  ;;  %v589_v37 = vpop.f32.mrf.mxu0 }
  0xd8   : > { %v678_v38 = vpop.f32.mrf.mxu1 }
  0xd9   : > { %899 = vst.msk [vmem:[%s1661_s20 + $0x48] sm:$0xf] %vm880_vm0, %v866_v34  ;;  %v851_v39 = vpack.c.bf16 %v819_v35, %v819_v35  ;;  %v769_v40 = vmul.f32 %v1649_v49, %v716_v36  ;;  %v679_v41 = vadd.f32 %v678_v38, %v589_v37 }
  0xdb   : > { %884 = vst.msk [vmem:[%s1661_s20 + $0xc] sm:$0xf] %vm880_vm0, %v851_v39  ;;  %v803_v42 = vadd.f32 %v1654_v52, %v769_v40  ;;  %v754_v43 = vmul.f32 %v1649_v49, %v679_v41 }
  0xdd   : > { %v835_v44 = vmax.f32 %v803_v42, 0.0  ;;  %v788_v45 = vadd.f32 %v1654_v52, %v754_v43  ;;  %v629_v46 = vpop.f32.mrf.mxu2 }
  0xde   : > { %v718_v47 = vpop.f32.mrf.mxu3 }
  0xdf   : > { %v867_v48 = vpack.c.bf16 %v835_v44, %v835_v44  ;;  %v820_v50 = vmax.f32 %v788_v45, 0.0  ;;  %v719_v51 = vadd.f32 %v718_v47, %v629_v46  ;;  %v591_v53 = vpop.f32.mrf.mxu0 }
  0xe0   : > { %v680_v54 = vpop.f32.mrf.mxu1 }
  0xe1   : > { %900 = vst.msk [vmem:[%s1661_s20 + $0x4c] sm:$0xf] %vm880_vm0, %v867_v48  ;;  %v852_v55 = vpack.c.bf16 %v820_v50, %v820_v50  ;;  %v770_v56 = vmul.f32 %v1649_v49, %v719_v51  ;;  %v681_v57 = vadd.f32 %v680_v54, %v591_v53 }
  0xe3   : > { %885 = vst.msk [vmem:[%s1661_s20 + $0x10] sm:$0xf] %vm880_vm0, %v852_v55  ;;  %v804_v58 = vadd.f32 %v1654_v52, %v770_v56  ;;  %v755_v59 = vmul.f32 %v1649_v49, %v681_v57 }
  0xe5   : > { %v836_v60 = vmax.f32 %v804_v58, 0.0  ;;  %v789_v61 = vadd.f32 %v1654_v52, %v755_v59  ;;  %v631_v62 = vpop.f32.mrf.mxu2 }
  0xe6   : > { %v720_v63 = vpop.f32.mrf.mxu3 }
  0xe7   : > { %v868_v0 = vpack.c.bf16 %v836_v60, %v836_v60  ;;  %v821_v1 = vmax.f32 %v789_v61, 0.0  ;;  %v721_v2 = vadd.f32 %v720_v63, %v631_v62  ;;  %v594_v3 = vpop.f32.mrf.mxu0 }
  0xe8   : > { %v683_v4 = vpop.f32.mrf.mxu1 }
  0xe9   : > { %901 = vst.msk [vmem:[%s1661_s20 + $0x50] sm:$0xf] %vm880_vm0, %v868_v0  ;;  %v853_v5 = vpack.c.bf16 %v821_v1, %v821_v1  ;;  %v771_v6 = vmul.f32 %v1649_v49, %v721_v2  ;;  %v684_v7 = vadd.f32 %v683_v4, %v594_v3 }
  0xeb   : > { %886 = vst.msk [vmem:[%s1661_s20 + $0x14] sm:$0xf] %vm880_vm0, %v853_v5  ;;  %v805_v8 = vadd.f32 %v1654_v52, %v771_v6  ;;  %v756_v9 = vmul.f32 %v1649_v49, %v684_v7 }
  0xed   : > { %v837_v10 = vmax.f32 %v805_v8, 0.0  ;;  %v790_v11 = vadd.f32 %v1654_v52, %v756_v9  ;;  %v634_v12 = vpop.f32.mrf.mxu2 }
  0xee   : > { %v723_v13 = vpop.f32.mrf.mxu3 }
  0xef   : > { %v869_v14 = vpack.c.bf16 %v837_v10, %v837_v10  ;;  %v822_v15 = vmax.f32 %v790_v11, 0.0  ;;  %v724_v16 = vadd.f32 %v723_v13, %v634_v12  ;;  %v596_v17 = vpop.f32.mrf.mxu0 }
  0xf0   : > { %v685_v18 = vpop.f32.mrf.mxu1 }
  0xf1   : > { %902 = vst.msk [vmem:[%s1661_s20 + $0x54] sm:$0xf] %vm880_vm0, %v869_v14  ;;  %v854_v19 = vpack.c.bf16 %v822_v15, %v822_v15  ;;  %v772_v20 = vmul.f32 %v1649_v49, %v724_v16  ;;  %v686_v21 = vadd.f32 %v685_v18, %v596_v17 }
  0xf3   : > { %887 = vst.msk [vmem:[%s1661_s20 + $0x18] sm:$0xf] %vm880_vm0, %v854_v19  ;;  %v806_v22 = vadd.f32 %v1654_v52, %v772_v20  ;;  %v757_v23 = vmul.f32 %v1649_v49, %v686_v21 }
  0xf5   : > { %v838_v24 = vmax.f32 %v806_v22, 0.0  ;;  %v791_v25 = vadd.f32 %v1654_v52, %v757_v23  ;;  %v636_v26 = vpop.f32.mrf.mxu2 }
  0xf6   : > { %v725_v27 = vpop.f32.mrf.mxu3 }
  0xf7   : > { %v870_v28 = vpack.c.bf16 %v838_v24, %v838_v24  ;;  %v823_v29 = vmax.f32 %v791_v25, 0.0  ;;  %v726_v30 = vadd.f32 %v725_v27, %v636_v26  ;;  %v599_v31 = vpop.f32.mrf.mxu0 }
  0xf8   : > { %v688_v32 = vpop.f32.mrf.mxu1 }
  0xf9   : > { %903 = vst.msk [vmem:[%s1661_s20 + $0x58] sm:$0xf] %vm880_vm0, %v870_v28  ;;  %v855_v33 = vpack.c.bf16 %v823_v29, %v823_v29  ;;  %v773_v34 = vmul.f32 %v1649_v49, %v726_v30  ;;  %v689_v35 = vadd.f32 %v688_v32, %v599_v31 }
  0xfb   : > { %888 = vst.msk [vmem:[%s1661_s20 + $0x1c] sm:$0xf] %vm880_vm0, %v855_v33  ;;  %v807_v36 = vadd.f32 %v1654_v52, %v773_v34  ;;  %v758_v37 = vmul.f32 %v1649_v49, %v689_v35 }
  0xfd   : > { %v839_v38 = vmax.f32 %v807_v36, 0.0  ;;  %v792_v39 = vadd.f32 %v1654_v52, %v758_v37  ;;  %v639_v40 = vpop.f32.mrf.mxu2 }
  0xfe   : > { %v728_v41 = vpop.f32.mrf.mxu3 }
  0xff   : > { %v871_v42 = vpack.c.bf16 %v839_v38, %v839_v38  ;;  %v824_v43 = vmax.f32 %v792_v39, 0.0  ;;  %v729_v44 = vadd.f32 %v728_v41, %v639_v40  ;;  %v601_v45 = vpop.f32.mrf.mxu0 }
 0x100   : > { %v690_v46 = vpop.f32.mrf.mxu1 }
 0x101   : > { %904 = vst.msk [vmem:[%s1661_s20 + $0x5c] sm:$0xf] %vm880_vm0, %v871_v42  ;;  %v856_v47 = vpack.c.bf16 %v824_v43, %v824_v43  ;;  %v774_v48 = vmul.f32 %v1649_v49, %v729_v44  ;;  %v691_v50 = vadd.f32 %v690_v46, %v601_v45 }
 0x103   : > { %889 = vst.msk [vmem:[%s1661_s20 + $0x20] sm:$0xf] %vm880_vm0, %v856_v47  ;;  %v808_v51 = vadd.f32 %v1654_v52, %v774_v48  ;;  %v759_v53 = vmul.f32 %v1649_v49, %v691_v50 }
 0x105   : > { %v840_v54 = vmax.f32 %v808_v51, 0.0  ;;  %v793_v55 = vadd.f32 %v1654_v52, %v759_v53  ;;  %v641_v56 = vpop.f32.mrf.mxu2 }
 0x106   : > { %v730_v57 = vpop.f32.mrf.mxu3 }
 0x107   : > { %v872_v58 = vpack.c.bf16 %v840_v54, %v840_v54  ;;  %v825_v59 = vmax.f32 %v793_v55, 0.0  ;;  %v731_v60 = vadd.f32 %v730_v57, %v641_v56  ;;  %v604_v61 = vpop.f32.mrf.mxu0 }
 0x108   : > { %v693_v62 = vpop.f32.mrf.mxu1 }
 0x109   : > { %905 = vst.msk [vmem:[%s1661_s20 + $0x60] sm:$0xf] %vm880_vm0, %v872_v58  ;;  %v857_v63 = vpack.c.bf16 %v825_v59, %v825_v59  ;;  %v775_v0 = vmul.f32 %v1649_v49, %v731_v60  ;;  %v694_v1 = vadd.f32 %v693_v62, %v604_v61 }
 0x10b   : > { %890 = vst.msk [vmem:[%s1661_s20 + $0x24] sm:$0xf] %vm880_vm0, %v857_v63  ;;  %v809_v2 = vadd.f32 %v1654_v52, %v775_v0  ;;  %v760_v3 = vmul.f32 %v1649_v49, %v694_v1 }
 0x10d   : > { %v841_v4 = vmax.f32 %v809_v2, 0.0  ;;  %v794_v5 = vadd.f32 %v1654_v52, %v760_v3  ;;  %v644_v6 = vpop.f32.mrf.mxu2 }
 0x10e   : > { %v733_v7 = vpop.f32.mrf.mxu3 }
 0x10f   : > { %v873_v8 = vpack.c.bf16 %v841_v4, %v841_v4  ;;  %v826_v9 = vmax.f32 %v794_v5, 0.0  ;;  %v734_v10 = vadd.f32 %v733_v7, %v644_v6  ;;  %v606_v11 = vpop.f32.mrf.mxu0 }
 0x110   : > { %v695_v12 = vpop.f32.mrf.mxu1 }
 0x111   : > { %906 = vst.msk [vmem:[%s1661_s20 + $0x64] sm:$0xf] %vm880_vm0, %v873_v8  ;;  %v858_v13 = vpack.c.bf16 %v826_v9, %v826_v9  ;;  %v776_v14 = vmul.f32 %v1649_v49, %v734_v10  ;;  %v696_v15 = vadd.f32 %v695_v12, %v606_v11 }
 0x113   : > { %891 = vst.msk [vmem:[%s1661_s20 + $0x28] sm:$0xf] %vm880_vm0, %v858_v13  ;;  %v810_v16 = vadd.f32 %v1654_v52, %v776_v14  ;;  %v761_v17 = vmul.f32 %v1649_v49, %v696_v15 }
 0x115   : > { %v842_v18 = vmax.f32 %v810_v16, 0.0  ;;  %v795_v19 = vadd.f32 %v1654_v52, %v761_v17  ;;  %v646_v20 = vpop.f32.mrf.mxu2 }
 0x116   : > { %v735_v21 = vpop.f32.mrf.mxu3 }
 0x117   : > { %v874_v22 = vpack.c.bf16 %v842_v18, %v842_v18  ;;  %v827_v23 = vmax.f32 %v795_v19, 0.0  ;;  %v736_v24 = vadd.f32 %v735_v21, %v646_v20  ;;  %v609_v25 = vpop.f32.mrf.mxu0 }
 0x118   : > { %v698_v26 = vpop.f32.mrf.mxu1 }
 0x119   : > { %907 = vst.msk [vmem:[%s1661_s20 + $0x68] sm:$0xf] %vm880_vm0, %v874_v22  ;;  %v859_v27 = vpack.c.bf16 %v827_v23, %v827_v23  ;;  %v777_v28 = vmul.f32 %v1649_v49, %v736_v24  ;;  %v699_v29 = vadd.f32 %v698_v26, %v609_v25 }
 0x11b   : > { %892 = vst.msk [vmem:[%s1661_s20 + $0x2c] sm:$0xf] %vm880_vm0, %v859_v27  ;;  %v811_v30 = vadd.f32 %v1654_v52, %v777_v28  ;;  %v762_v31 = vmul.f32 %v1649_v49, %v699_v29 }
 0x11d   : > { %v843_v32 = vmax.f32 %v811_v30, 0.0  ;;  %v796_v33 = vadd.f32 %v1654_v52, %v762_v31  ;;  %v649_v34 = vpop.f32.mrf.mxu2 }
 0x11e   : > { %v738_v35 = vpop.f32.mrf.mxu3 }
 0x11f   : > { %v875_v36 = vpack.c.bf16 %v843_v32, %v843_v32  ;;  %v828_v37 = vmax.f32 %v796_v33, 0.0  ;;  %v739_v38 = vadd.f32 %v738_v35, %v649_v34  ;;  %v611_v39 = vpop.f32.mrf.mxu0 }
 0x120   : > { %v700_v40 = vpop.f32.mrf.mxu1 }
 0x121   : > { %908 = vst.msk [vmem:[%s1661_s20 + $0x6c] sm:$0xf] %vm880_vm0, %v875_v36  ;;  %v860_v41 = vpack.c.bf16 %v828_v37, %v828_v37  ;;  %v778_v42 = vmul.f32 %v1649_v49, %v739_v38  ;;  %v701_v43 = vadd.f32 %v700_v40, %v611_v39 }
 0x123   : > { %893 = vst.msk [vmem:[%s1661_s20 + $0x30] sm:$0xf] %vm880_vm0, %v860_v41  ;;  %v812_v44 = vadd.f32 %v1654_v52, %v778_v42  ;;  %v763_v45 = vmul.f32 %v1649_v49, %v701_v43 }
 0x125   : > { %v844_v46 = vmax.f32 %v812_v44, 0.0  ;;  %v797_v47 = vadd.f32 %v1654_v52, %v763_v45  ;;  %v651_v48 = vpop.f32.mrf.mxu2 }
 0x126   : > { %v740_v50 = vpop.f32.mrf.mxu3 }
 0x127   : > { %v876_v51 = vpack.c.bf16 %v844_v46, %v844_v46  ;;  %v829_v53 = vmax.f32 %v797_v47, 0.0  ;;  %v741_v54 = vadd.f32 %v740_v50, %v651_v48  ;;  %v614_v55 = vpop.f32.mrf.mxu0 }
 0x128   : > { %v703_v56 = vpop.f32.mrf.mxu1 }
 0x129   : > { %909 = vst.msk [vmem:[%s1661_s20 + $0x70] sm:$0xf] %vm880_vm0, %v876_v51  ;;  %v861_v57 = vpack.c.bf16 %v829_v53, %v829_v53  ;;  %v779_v58 = vmul.f32 %v1649_v49, %v741_v54  ;;  %v704_v59 = vadd.f32 %v703_v56, %v614_v55 }
 0x12b   : > { %894 = vst.msk [vmem:[%s1661_s20 + $0x34] sm:$0xf] %vm880_vm0, %v861_v57  ;;  %v813_v60 = vadd.f32 %v1654_v52, %v779_v58  ;;  %v764_v61 = vmul.f32 %v1649_v49, %v704_v59 }
 0x12d   : > { %v845_v62 = vmax.f32 %v813_v60, 0.0  ;;  %v798_v63 = vadd.f32 %v1654_v52, %v764_v61  ;;  %v654_v0 = vpop.f32.mrf.mxu2 }
 0x12e   : > { %v743_v1 = vpop.f32.mrf.mxu3 }
 0x12f   : > { %v877_v2 = vpack.c.bf16 %v845_v62, %v845_v62  ;;  %v830_v3 = vmax.f32 %v798_v63, 0.0  ;;  %v744_v4 = vadd.f32 %v743_v1, %v654_v0  ;;  %v616_v5 = vpop.f32.mrf.mxu0 }
 0x130   : > { %v705_v6 = vpop.f32.mrf.mxu1 }
 0x131   : > { %910 = vst.msk [vmem:[%s1661_s20 + $0x74] sm:$0xf] %vm880_vm0, %v877_v2  ;;  %v862_v7 = vpack.c.bf16 %v830_v3, %v830_v3  ;;  %v780_v8 = vmul.f32 %v1649_v49, %v744_v4  ;;  %v706_v9 = vadd.f32 %v705_v6, %v616_v5 }
 0x133   : > { %895 = vst.msk [vmem:[%s1661_s20 + $0x38] sm:$0xf] %vm880_vm0, %v862_v7  ;;  %v814_v10 = vadd.f32 %v1654_v52, %v780_v8  ;;  %v765_v11 = vmul.f32 %v1649_v49, %v706_v9 }
 0x135   : > { %v846_v12 = vmax.f32 %v814_v10, 0.0  ;;  %v799_v13 = vadd.f32 %v1654_v52, %v765_v11  ;;  %v656_v14 = vpop.f32.mrf.mxu2 }
 0x136   : > { %v745_v15 = vpop.f32.mrf.mxu3 }
 0x137   : > { %v878_v16 = vpack.c.bf16 %v846_v12, %v846_v12  ;;  %v831_v17 = vmax.f32 %v799_v13, 0.0  ;;  %v746_v18 = vadd.f32 %v745_v15, %v656_v14 }
 0x139   : > { %911 = vst.msk [vmem:[%s1661_s20 + $0x78] sm:$0xf] %vm880_vm0, %v878_v16  ;;  %v863_v19 = vpack.c.bf16 %v831_v17, %v831_v17  ;;  %v781_v20 = vmul.f32 %v1649_v49, %v746_v18 }
 0x13b   : > { %896 = vst.msk [vmem:[%s1661_s20 + $0x3c] sm:$0xf] %vm880_vm0, %v863_v19  ;;  %v815_v21 = vadd.f32 %v1654_v52, %v781_v20 }
 0x13d   : > { %v847_v22 = vmax.f32 %v815_v21, 0.0 }
 0x13f   : > { %v879_v23 = vpack.c.bf16 %v847_v22, %v847_v22 }
 0x141   : > { %912 = vst.msk [vmem:[%s1661_s20 + $0x7c] sm:$0xf] %vm880_vm0, %v879_v23 }
 0x142 PF: > { %s16_s17 = sadd.s32 1, %s1442_s17   ;;  %s1813_s12 = smov %s1426_s13 }
 0x143   : > { %p13_p0 = scmp.ge.s32.totalorder %s16_s17, 10   ;;  %s1814_s13 = smov %s1430_s14 }
 0x144   : > { %s1815_s14 = smov %s1515_s24  ;;  %s1816_s15 = smov %s1438_s16 }
 0x145   : > { %s1817_s16 = smov %s1819_s19  ;;  %15 = sbr.rel (!%p13_p0) target bundleno = 4 (0x4), region = 78 }
 0x14a   :  { %941 = vsyncpa [#allocation3], 1 }
 0x14b   :  { %943 = vsyncpa [#allocation3 + $0x1], 1 }

</bundles_post_ra>
